<compile_context>
chip_gen: v7x
topology: tpu7x:2x2x1
jax: 0.10.0
libtpu: 0.0.40
codegen_flags: <defaults>
</compile_context>

<pallas_src>
import functools

import jax
import jax.numpy as jnp
from jax import lax
from jax.experimental import pallas as pl
from jax.experimental.pallas import tpu as pltpu


# ---------------------------------------------------------------------------
# Shared gate math (PyTorch LSTM semantics, gate order i, f, g, o) - reference only
# ---------------------------------------------------------------------------
def _lstm_gate_math(gates, c, H):
    i = jax.nn.sigmoid(gates[:, 0 * H:1 * H])
    f = jax.nn.sigmoid(gates[:, 1 * H:2 * H])
    g = jnp.tanh(gates[:, 2 * H:3 * H])
    o = jax.nn.sigmoid(gates[:, 3 * H:4 * H])
    c_new = f * c + i * g
    h_new = o * jnp.tanh(c_new)
    return h_new, c_new


# ---------------------------------------------------------------------------
# Kernel
# ---------------------------------------------------------------------------
def bidir_lstm2_kernel(xx_ref, wbig_ref, bias_ref, whh_ref, we0_ref, we1_ref,
                       blin_ref, out_ref, gx_ref, *, T, B, H):
    H2 = 2 * H

    # ---- hoisted input projection: one big MXU matmul for both directions + bias ----
    gx_ref[...] = (jnp.dot(xx_ref[...], wbig_ref[...],
                           preferred_element_type=jnp.float32) + bias_ref[...])

    whh = whh_ref[...]                      # (2H, 8H) block-diagonal recurrent weight
    cdt = whh.dtype

    def step(s, h2, c2):
        # Row-slab s of gx already interleaves fwd(time s) and bwd(time T-1-s) gates.
        start = pl.multiple_of(s * B, B)
        gates = gx_ref[pl.ds(start, B), :] + jnp.dot(
            h2.astype(cdt), whh, preferred_element_type=jnp.float32)    # (B, 8H)
        # layout: [i_f, i_b, f_f, f_b, o_f, o_b, g_f, g_b]
        sig = jax.nn.sigmoid(gates[:, :6 * H])       # one sigmoid over (B, 6H)
        g2 = jnp.tanh(gates[:, 6 * H:])              # [g_f | g_b]            (B, 2H)
        i2 = sig[:, 0:H2]                            # [i_f | i_b]
        f2 = sig[:, H2:2 * H2]                       # [f_f | f_b]
        o2 = sig[:, 2 * H2:3 * H2]                   # [o_f | o_b]
        c2n = f2 * c2 + i2 * g2
        h2n = o2 * jnp.tanh(c2n)
        return h2n, c2n

    zeros2 = jnp.zeros((B, H2), jnp.float32)
    # Step 0 outside the loop: h2_0 = [h_fwd(t=0) | h_bwd(t=T-1)] is part of the encoding.
    h2_0, c2_0 = step(0, zeros2, zeros2)

    unroll = min(max(T - 1, 1), 8)
    h2_T, _ = lax.fori_loop(1, T, lambda s, carry: step(s, *carry),
                            (h2_0, c2_0), unroll=unroll)
    # h2_T = [h_fwd(t=T-1) | h_bwd(t=0)]

    # encoding = [h_f(0) | h_b(0) | h_f(T-1) | h_b(T-1)]
    #          -> two accumulated (B,2H)x(2H,nOut_pad) matmuls with reordered wlin rows.
    out = (jnp.dot(h2_0.astype(cdt), we0_ref[...], preferred_element_type=jnp.float32)
           + jnp.dot(h2_T.astype(cdt), we1_ref[...], preferred_element_type=jnp.float32)
           + blin_ref[...])
    out_ref[...] = out.astype(out_ref.dtype)


# ---------------------------------------------------------------------------
# Wrapper
# ---------------------------------------------------------------------------
def _split_gates(w, H):
    # torch gate order [i, f, g, o] along the last (4H) axis
    return (w[..., 0:H], w[..., H:2 * H], w[..., 2 * H:3 * H], w[..., 3 * H:4 * H])


def _interleave_dirs(wf, wb, H):
    # -> columns [i_f, i_b, f_f, f_b, o_f, o_b, g_f, g_b]
    i_f, f_f, g_f, o_f = _split_gates(wf, H)
    i_b, f_b, g_b, o_b = _split_gates(wb, H)
    return jnp.concatenate([i_f, i_b, f_f, f_b, o_f, o_b, g_f, g_b], axis=-1)


def bidirectional_lstm2(x, params, *, compute_dtype=jnp.bfloat16):
    T, B, nIn = x.shape
    H = params["whh_f"].shape[0]
    nOut = params["wlin"].shape[1]
    cdt = compute_dtype

    B_pad = max(8, -(-B // 8) * 8)                  # sublane-dense batch
    nOut_pad = -(-nOut // 128) * 128                # lane-dense output

    x = jnp.pad(x.astype(jnp.float32), ((0, 0), (0, B_pad - B), (0, 0)))
    # Feature-concat x with its time-reversed copy so one matmul produces, per recurrence
    # step s, forward gates for time s and backward gates for time T-1-s in the same rows.
    x2d = x.reshape(T * B_pad, nIn)
    x2d_rev = x[::-1].reshape(T * B_pad, nIn)
    xx = jnp.concatenate([x2d, x2d_rev], axis=1).astype(cdt)         # (T*B_pad, 2*nIn)

    zi = jnp.zeros_like(params["wih_f"])
    wbig = _interleave_dirs(
        jnp.concatenate([params["wih_f"], zi], axis=0),
        jnp.concatenate([zi, params["wih_b"]], axis=0), H).astype(cdt)   # (2*nIn, 8H)
    bias8 = _interleave_dirs(params["b_f"], params["b_b"], H).astype(jnp.float32)  # (1, 8H)

    zh = jnp.zeros_like(params["whh_f"])
    whh = _interleave_dirs(
        jnp.concatenate([params["whh_f"], zh], axis=0),
        jnp.concatenate([zh, params["whh_b"]], axis=0), H).astype(cdt)   # (2H, 8H) blockdiag

    wlin = jnp.pad(params["wlin"], ((0, 0), (0, nOut_pad - nOut)))
    # h2_0 = [h_f(0)|h_b(T-1)] multiplies rows [0:H, 3H:4H]; h2_T = [h_f(T-1)|h_b(0)]
    # multiplies rows [2H:3H, H:2H] of the (4H, nOut) linear weight.
    we0 = jnp.concatenate([wlin[0:H], wlin[3 * H:4 * H]], axis=0).astype(cdt)
    we1 = jnp.concatenate([wlin[2 * H:3 * H], wlin[H:2 * H]], axis=0).astype(cdt)
    blin = jnp.pad(params["blin"], ((0, 0), (0, nOut_pad - nOut))).astype(jnp.float32)

    kernel = functools.partial(bidir_lstm2_kernel, T=T, B=B_pad, H=H)
    vmem = pl.BlockSpec(memory_space=pltpu.MemorySpace.VMEM)

    def _nbytes(a):
        return a.size * a.dtype.itemsize

    resident = (_nbytes(xx) + _nbytes(wbig) + _nbytes(bias8) + _nbytes(whh)
                + _nbytes(we0) + _nbytes(we1) + _nbytes(blin)
                + T * B_pad * 8 * H * 4            # gx scratch (f32)
                + B_pad * nOut_pad * 4)            # padded output
    try:
        vmem_cap = int(pltpu.get_tpu_info().vmem_capacity_bytes)
    except Exception:
        vmem_cap = 64 << 20
    vmem_limit = int(min(max(int(1.25 * resident) + (4 << 20), 32 << 20),
                         vmem_cap - (4 << 20)))

    out = pl.pallas_call(
        kernel,
        out_shape=jax.ShapeDtypeStruct((B_pad, nOut_pad), jnp.float32),
        in_specs=[vmem] * 7,
        out_specs=vmem,
        scratch_shapes=[pltpu.VMEM((T * B_pad, 8 * H), jnp.float32)],
        compiler_params=pltpu.CompilerParams(vmem_limit_bytes=vmem_limit),
    )(xx, wbig, bias8, whh, we0, we1, blin)

    return out[:B, :nOut]


# ---------------------------------------------------------------------------
# Deterministic parameter init (PyTorch shapes, then transposed for the kernel)
# ---------------------------------------------------------------------------
def init_params(key, nIn, nHidden, nOut):
    k_lstm = 1.0 / jnp.sqrt(nHidden)
    k_lin = 1.0 / jnp.sqrt(4.0 * nHidden)
    keys = jax.random.split(key, 10)

    def unif(k, shape, bound):
        return jax.random.uniform(k, shape, jnp.float32, -bound, bound)

    # torch: weight_ih (4H, nIn), weight_hh (4H, H), biases (4H,) — gate order i,f,g,o
    wih_f_t = unif(keys[0], (4 * nHidden, nIn), k_lstm)
    whh_f_t = unif(keys[1], (4 * nHidden, nHidden), k_lstm)
    b_f = unif(keys[2], (4 * nHidden,), k_lstm) + unif(keys[3], (4 * nHidden,), k_lstm)
    wih_b_t = unif(keys[4], (4 * nHidden, nIn), k_lstm)
    whh_b_t = unif(keys[5], (4 * nHidden, nHidden), k_lstm)
    b_b = unif(keys[6], (4 * nHidden,), k_lstm) + unif(keys[7], (4 * nHidden,), k_lstm)
    # torch Linear: weight (nOut, 4H), bias (nOut,)
    wlin_t = unif(keys[8], (nOut, 4 * nHidden), k_lin)
    blin = unif(keys[9], (nOut,), k_lin)

    return {
        "wih_f": wih_f_t.T, "whh_f": whh_f_t.T, "b_f": b_f.reshape(1, -1),
        "wih_b": wih_b_t.T, "whh_b": whh_b_t.T, "b_b": b_b.reshape(1, -1),
        "wlin": wlin_t.T, "blin": blin.reshape(1, -1),
    }


# ---------------------------------------------------------------------------
# Pure-JAX reference (same math, no Pallas) for a correctness check
# ---------------------------------------------------------------------------
def reference(x, params, H):
    T, B, _ = x.shape

    def run_dir(xs, wih, whh, b):
        def cell(carry, x_t):
            h, c = carry
            gates = x_t @ wih + h @ whh + b
            h, c = _lstm_gate_math(gates, c, H)
            return (h, c), h
        init = (jnp.zeros((B, H), jnp.float32), jnp.zeros((B, H), jnp.float32))
        _, hs = lax.scan(cell, init, xs)
        return hs                                            # (T, B, H)

    h_fwd = run_dir(x, params["wih_f"], params["whh_f"], params["b_f"])
    h_bwd_rev = run_dir(x[::-1], params["wih_b"], params["whh_b"], params["b_b"])
    h_bwd = h_bwd_rev[::-1]
    recurrent = jnp.concatenate([h_fwd, h_bwd], axis=-1)     # (T, B, 2H)
    encoding = jnp.concatenate([recurrent[0], recurrent[-1]], axis=-1)  # (B, 4H)
    return encoding @ params["wlin"] + params["blin"]


# ---------------------------------------------------------------------------
if __name__ == "__main__":
    T, B, nIn, nHidden, nOut = 8, 2, 16, 32, 16

    key = jax.random.PRNGKey(0)
    kx, kp = jax.random.split(key)
    x = jax.random.normal(kx, (T, B, nIn), jnp.float32)
    params = init_params(kp, nIn, nHidden, nOut)

    ref = reference(x, params, nHidden)

    # f32 compute path: matches PyTorch numerics tightly.
    out_f32 = bidirectional_lstm2(x, params, compute_dtype=jnp.float32)
    out_f32 = jax.block_until_ready(out_f32)
    assert out_f32.shape == (B, nOut)
    assert jnp.allclose(out_f32, ref, rtol=1e-4, atol=1e-4), "f32 kernel mismatch vs reference"

    # default bf16 matmul operands (f32 accumulation / carries): looser tolerance.
    out_bf16 = bidirectional_lstm2(x, params)
    out_bf16 = jax.block_until_ready(out_bf16)
    assert out_bf16.shape == (B, nOut)
    assert jnp.allclose(out_bf16, ref, rtol=5e-2, atol=5e-2), "bf16 kernel mismatch vs reference"

    print("KERNEL_OK")
</pallas_src>

<mosaic_0001>
module attributes {stable_mosaic.version = 11 : i64} {
  func.func @bidir_lstm2_kernel(%arg0: memref<64x32xf32, #tpu.memory_space<vmem>>, %arg1: memref<32x256xf32, #tpu.memory_space<vmem>>, %arg2: memref<1x256xf32, #tpu.memory_space<vmem>>, %arg3: memref<64x256xf32, #tpu.memory_space<vmem>>, %arg4: memref<64x128xf32, #tpu.memory_space<vmem>>, %arg5: memref<64x128xf32, #tpu.memory_space<vmem>>, %arg6: memref<1x128xf32, #tpu.memory_space<vmem>>, %arg7: memref<8x128xf32, #tpu.memory_space<vmem>>, %arg8: memref<64x256xf32, #tpu.memory_space<vmem>>) attributes {dimension_semantics = [], scalar_prefetch = 0 : i64, scratch_operands = 1 : i64, tpu.core_type = #tpu.core_type<tc>} {
    %c0 = arith.constant 0 : index
    %c0_0 = arith.constant 0 : index
    %0 = vector.load %arg0[%c0, %c0_0] : memref<64x32xf32, #tpu.memory_space<vmem>>, vector<64x32xf32>
    %c0_1 = arith.constant 0 : index
    %c0_2 = arith.constant 0 : index
    %1 = vector.load %arg1[%c0_1, %c0_2] : memref<32x256xf32, #tpu.memory_space<vmem>>, vector<32x256xf32>
    %cst = arith.constant dense<0.000000e+00> : vector<64x256xf32>
    %2 = tpu.matmul %0, %1, %cst {dimension_numbers = #tpu.dot_dimension_numbers<[1], [0], [0], [1], [0, 0, 1, 1], [], []>} : vector<64x32xf32>, vector<32x256xf32>, vector<64x256xf32> -> vector<64x256xf32>
    %c0_3 = arith.constant 0 : index
    %c0_4 = arith.constant 0 : index
    %3 = vector.load %arg2[%c0_3, %c0_4] : memref<1x256xf32, #tpu.memory_space<vmem>>, vector<1x256xf32>
    %4 = vector.broadcast %3 : vector<1x256xf32> to vector<64x256xf32>
    %5 = arith.addf %2, %4 : vector<64x256xf32>
    %c0_5 = arith.constant 0 : index
    %c0_6 = arith.constant 0 : index
    %6 = vector.load %arg8[%c0_5, %c0_6] : memref<64x256xf32, #tpu.memory_space<vmem>>, vector<64x256xf32>
    tpu.vector_store %arg8[%c0_5, %c0_6], %5 {strides = array<i32>} : memref<64x256xf32, #tpu.memory_space<vmem>>, vector<64x256xf32>,
    %c0_7 = arith.constant 0 : index
    %c0_8 = arith.constant 0 : index
    %7 = vector.load %arg3[%c0_7, %c0_8] : memref<64x256xf32, #tpu.memory_space<vmem>>, vector<64x256xf32>
    %cst_9 = arith.constant 0.000000e+00 : f32
    %8 = vector.broadcast %cst_9 : f32 to vector<8x64xf32>
    %c0_i32 = arith.constant 0 : i32
    %9 = tpu.assume_multiple %c0_i32, 8 : i32
    %10 = arith.index_cast %9 : i32 to index
    %c0_10 = arith.constant 0 : index
    %11 = vector.load %arg8[%10, %c0_10] : memref<64x256xf32, #tpu.memory_space<vmem>>, vector<8x256xf32>
    %cst_11 = arith.constant dense<0.000000e+00> : vector<8x256xf32>
    %12 = tpu.matmul %8, %7, %cst_11 {dimension_numbers = #tpu.dot_dimension_numbers<[1], [0], [0], [1], [0, 0, 1, 1], [], []>} : vector<8x64xf32>, vector<64x256xf32>, vector<8x256xf32> -> vector<8x256xf32>
    %13 = arith.addf %11, %12 : vector<8x256xf32>
    %14 = vector.extract_strided_slice %13 {offsets = [0, 0], sizes = [8, 192], strides = [1, 1]} : vector<8x256xf32> to vector<8x192xf32>
    %15 = arith.negf %14 : vector<8x192xf32>
    %16 = math.exp %15 : vector<8x192xf32>
    %cst_12 = arith.constant 1.000000e+00 : f32
    %17 = vector.broadcast %cst_12 : f32 to vector<8x192xf32>
    %18 = arith.addf %17, %16 : vector<8x192xf32>
    %19 = arith.divf %17, %18 : vector<8x192xf32>
    %20 = vector.extract_strided_slice %13 {offsets = [0, 192], sizes = [8, 64], strides = [1, 1]} : vector<8x256xf32> to vector<8x64xf32>
    %21 = math.tanh %20 : vector<8x64xf32>
    %22 = vector.extract_strided_slice %19 {offsets = [0, 0], sizes = [8, 64], strides = [1, 1]} : vector<8x192xf32> to vector<8x64xf32>
    %23 = vector.extract_strided_slice %19 {offsets = [0, 64], sizes = [8, 64], strides = [1, 1]} : vector<8x192xf32> to vector<8x64xf32>
    %24 = vector.extract_strided_slice %19 {offsets = [0, 128], sizes = [8, 64], strides = [1, 1]} : vector<8x192xf32> to vector<8x64xf32>
    %25 = arith.mulf %23, %8 : vector<8x64xf32>
    %26 = arith.mulf %22, %21 : vector<8x64xf32>
    %27 = arith.addf %25, %26 : vector<8x64xf32>
    %28 = math.tanh %27 : vector<8x64xf32>
    %29 = arith.mulf %24, %28 : vector<8x64xf32>
    %c1_i32 = arith.constant 1 : i32
    %c8_i32 = arith.constant 8 : i32
    %30 = arith.muli %c1_i32, %c8_i32 : i32
    %31 = tpu.assume_multiple %30, 8 : i32
    %32 = arith.index_cast %31 : i32 to index
    %c0_13 = arith.constant 0 : index
    %33 = vector.load %arg8[%32, %c0_13] : memref<64x256xf32, #tpu.memory_space<vmem>>, vector<8x256xf32>
    %cst_14 = arith.constant dense<0.000000e+00> : vector<8x256xf32>
    %34 = tpu.matmul %29, %7, %cst_14 {dimension_numbers = #tpu.dot_dimension_numbers<[1], [0], [0], [1], [0, 0, 1, 1], [], []>} : vector<8x64xf32>, vector<64x256xf32>, vector<8x256xf32> -> vector<8x256xf32>
    %35 = arith.addf %33, %34 : vector<8x256xf32>
    %36 = vector.extract_strided_slice %35 {offsets = [0, 0], sizes = [8, 192], strides = [1, 1]} : vector<8x256xf32> to vector<8x192xf32>
    %37 = arith.negf %36 : vector<8x192xf32>
    %38 = math.exp %37 : vector<8x192xf32>
    %cst_15 = arith.constant 1.000000e+00 : f32
    %39 = vector.broadcast %cst_15 : f32 to vector<8x192xf32>
    %40 = arith.addf %39, %38 : vector<8x192xf32>
    %41 = arith.divf %39, %40 : vector<8x192xf32>
    %42 = vector.extract_strided_slice %35 {offsets = [0, 192], sizes = [8, 64], strides = [1, 1]} : vector<8x256xf32> to vector<8x64xf32>
    %43 = math.tanh %42 : vector<8x64xf32>
    %44 = vector.extract_strided_slice %41 {offsets = [0, 0], sizes = [8, 64], strides = [1, 1]} : vector<8x192xf32> to vector<8x64xf32>
    %45 = vector.extract_strided_slice %41 {offsets = [0, 64], sizes = [8, 64], strides = [1, 1]} : vector<8x192xf32> to vector<8x64xf32>
    %46 = vector.extract_strided_slice %41 {offsets = [0, 128], sizes = [8, 64], strides = [1, 1]} : vector<8x192xf32> to vector<8x64xf32>
    %47 = arith.mulf %45, %27 : vector<8x64xf32>
    %48 = arith.mulf %44, %43 : vector<8x64xf32>
    %49 = arith.addf %47, %48 : vector<8x64xf32>
    %50 = math.tanh %49 : vector<8x64xf32>
    %51 = arith.mulf %46, %50 : vector<8x64xf32>
    %c2_i32 = arith.constant 2 : i32
    %c8_i32_16 = arith.constant 8 : i32
    %52 = arith.muli %c2_i32, %c8_i32_16 : i32
    %53 = tpu.assume_multiple %52, 8 : i32
    %54 = arith.index_cast %53 : i32 to index
    %c0_17 = arith.constant 0 : index
    %55 = vector.load %arg8[%54, %c0_17] : memref<64x256xf32, #tpu.memory_space<vmem>>, vector<8x256xf32>
    %cst_18 = arith.constant dense<0.000000e+00> : vector<8x256xf32>
    %56 = tpu.matmul %51, %7, %cst_18 {dimension_numbers = #tpu.dot_dimension_numbers<[1], [0], [0], [1], [0, 0, 1, 1], [], []>} : vector<8x64xf32>, vector<64x256xf32>, vector<8x256xf32> -> vector<8x256xf32>
    %57 = arith.addf %55, %56 : vector<8x256xf32>
    %58 = vector.extract_strided_slice %57 {offsets = [0, 0], sizes = [8, 192], strides = [1, 1]} : vector<8x256xf32> to vector<8x192xf32>
    %59 = arith.negf %58 : vector<8x192xf32>
    %60 = math.exp %59 : vector<8x192xf32>
    %cst_19 = arith.constant 1.000000e+00 : f32
    %61 = vector.broadcast %cst_19 : f32 to vector<8x192xf32>
    %62 = arith.addf %61, %60 : vector<8x192xf32>
    %63 = arith.divf %61, %62 : vector<8x192xf32>
    %64 = vector.extract_strided_slice %57 {offsets = [0, 192], sizes = [8, 64], strides = [1, 1]} : vector<8x256xf32> to vector<8x64xf32>
    %65 = math.tanh %64 : vector<8x64xf32>
    %66 = vector.extract_strided_slice %63 {offsets = [0, 0], sizes = [8, 64], strides = [1, 1]} : vector<8x192xf32> to vector<8x64xf32>
    %67 = vector.extract_strided_slice %63 {offsets = [0, 64], sizes = [8, 64], strides = [1, 1]} : vector<8x192xf32> to vector<8x64xf32>
    %68 = vector.extract_strided_slice %63 {offsets = [0, 128], sizes = [8, 64], strides = [1, 1]} : vector<8x192xf32> to vector<8x64xf32>
    %69 = arith.mulf %67, %49 : vector<8x64xf32>
    %70 = arith.mulf %66, %65 : vector<8x64xf32>
    %71 = arith.addf %69, %70 : vector<8x64xf32>
    %72 = math.tanh %71 : vector<8x64xf32>
    %73 = arith.mulf %68, %72 : vector<8x64xf32>
    %c3_i32 = arith.constant 3 : i32
    %c8_i32_20 = arith.constant 8 : i32
    %74 = arith.muli %c3_i32, %c8_i32_20 : i32
    %75 = tpu.assume_multiple %74, 8 : i32
    %76 = arith.index_cast %75 : i32 to index
    %c0_21 = arith.constant 0 : index
    %77 = vector.load %arg8[%76, %c0_21] : memref<64x256xf32, #tpu.memory_space<vmem>>, vector<8x256xf32>
    %cst_22 = arith.constant dense<0.000000e+00> : vector<8x256xf32>
    %78 = tpu.matmul %73, %7, %cst_22 {dimension_numbers = #tpu.dot_dimension_numbers<[1], [0], [0], [1], [0, 0, 1, 1], [], []>} : vector<8x64xf32>, vector<64x256xf32>, vector<8x256xf32> -> vector<8x256xf32>
    %79 = arith.addf %77, %78 : vector<8x256xf32>
    %80 = vector.extract_strided_slice %79 {offsets = [0, 0], sizes = [8, 192], strides = [1, 1]} : vector<8x256xf32> to vector<8x192xf32>
    %81 = arith.negf %80 : vector<8x192xf32>
    %82 = math.exp %81 : vector<8x192xf32>
    %cst_23 = arith.constant 1.000000e+00 : f32
    %83 = vector.broadcast %cst_23 : f32 to vector<8x192xf32>
    %84 = arith.addf %83, %82 : vector<8x192xf32>
    %85 = arith.divf %83, %84 : vector<8x192xf32>
    %86 = vector.extract_strided_slice %79 {offsets = [0, 192], sizes = [8, 64], strides = [1, 1]} : vector<8x256xf32> to vector<8x64xf32>
    %87 = math.tanh %86 : vector<8x64xf32>
    %88 = vector.extract_strided_slice %85 {offsets = [0, 0], sizes = [8, 64], strides = [1, 1]} : vector<8x192xf32> to vector<8x64xf32>
    %89 = vector.extract_strided_slice %85 {offsets = [0, 64], sizes = [8, 64], strides = [1, 1]} : vector<8x192xf32> to vector<8x64xf32>
    %90 = vector.extract_strided_slice %85 {offsets = [0, 128], sizes = [8, 64], strides = [1, 1]} : vector<8x192xf32> to vector<8x64xf32>
    %91 = arith.mulf %89, %71 : vector<8x64xf32>
    %92 = arith.mulf %88, %87 : vector<8x64xf32>
    %93 = arith.addf %91, %92 : vector<8x64xf32>
    %94 = math.tanh %93 : vector<8x64xf32>
    %95 = arith.mulf %90, %94 : vector<8x64xf32>
    %c4_i32 = arith.constant 4 : i32
    %c8_i32_24 = arith.constant 8 : i32
    %96 = arith.muli %c4_i32, %c8_i32_24 : i32
    %97 = tpu.assume_multiple %96, 8 : i32
    %98 = arith.index_cast %97 : i32 to index
    %c0_25 = arith.constant 0 : index
    %99 = vector.load %arg8[%98, %c0_25] : memref<64x256xf32, #tpu.memory_space<vmem>>, vector<8x256xf32>
    %cst_26 = arith.constant dense<0.000000e+00> : vector<8x256xf32>
    %100 = tpu.matmul %95, %7, %cst_26 {dimension_numbers = #tpu.dot_dimension_numbers<[1], [0], [0], [1], [0, 0, 1, 1], [], []>} : vector<8x64xf32>, vector<64x256xf32>, vector<8x256xf32> -> vector<8x256xf32>
    %101 = arith.addf %99, %100 : vector<8x256xf32>
    %102 = vector.extract_strided_slice %101 {offsets = [0, 0], sizes = [8, 192], strides = [1, 1]} : vector<8x256xf32> to vector<8x192xf32>
    %103 = arith.negf %102 : vector<8x192xf32>
    %104 = math.exp %103 : vector<8x192xf32>
    %cst_27 = arith.constant 1.000000e+00 : f32
    %105 = vector.broadcast %cst_27 : f32 to vector<8x192xf32>
    %106 = arith.addf %105, %104 : vector<8x192xf32>
    %107 = arith.divf %105, %106 : vector<8x192xf32>
    %108 = vector.extract_strided_slice %101 {offsets = [0, 192], sizes = [8, 64], strides = [1, 1]} : vector<8x256xf32> to vector<8x64xf32>
    %109 = math.tanh %108 : vector<8x64xf32>
    %110 = vector.extract_strided_slice %107 {offsets = [0, 0], sizes = [8, 64], strides = [1, 1]} : vector<8x192xf32> to vector<8x64xf32>
    %111 = vector.extract_strided_slice %107 {offsets = [0, 64], sizes = [8, 64], strides = [1, 1]} : vector<8x192xf32> to vector<8x64xf32>
    %112 = vector.extract_strided_slice %107 {offsets = [0, 128], sizes = [8, 64], strides = [1, 1]} : vector<8x192xf32> to vector<8x64xf32>
    %113 = arith.mulf %111, %93 : vector<8x64xf32>
    %114 = arith.mulf %110, %109 : vector<8x64xf32>
    %115 = arith.addf %113, %114 : vector<8x64xf32>
    %116 = math.tanh %115 : vector<8x64xf32>
    %117 = arith.mulf %112, %116 : vector<8x64xf32>
    %c5_i32 = arith.constant 5 : i32
    %c8_i32_28 = arith.constant 8 : i32
    %118 = arith.muli %c5_i32, %c8_i32_28 : i32
    %119 = tpu.assume_multiple %118, 8 : i32
    %120 = arith.index_cast %119 : i32 to index
    %c0_29 = arith.constant 0 : index
    %121 = vector.load %arg8[%120, %c0_29] : memref<64x256xf32, #tpu.memory_space<vmem>>, vector<8x256xf32>
    %cst_30 = arith.constant dense<0.000000e+00> : vector<8x256xf32>
    %122 = tpu.matmul %117, %7, %cst_30 {dimension_numbers = #tpu.dot_dimension_numbers<[1], [0], [0], [1], [0, 0, 1, 1], [], []>} : vector<8x64xf32>, vector<64x256xf32>, vector<8x256xf32> -> vector<8x256xf32>
    %123 = arith.addf %121, %122 : vector<8x256xf32>
    %124 = vector.extract_strided_slice %123 {offsets = [0, 0], sizes = [8, 192], strides = [1, 1]} : vector<8x256xf32> to vector<8x192xf32>
    %125 = arith.negf %124 : vector<8x192xf32>
    %126 = math.exp %125 : vector<8x192xf32>
    %cst_31 = arith.constant 1.000000e+00 : f32
    %127 = vector.broadcast %cst_31 : f32 to vector<8x192xf32>
    %128 = arith.addf %127, %126 : vector<8x192xf32>
    %129 = arith.divf %127, %128 : vector<8x192xf32>
    %130 = vector.extract_strided_slice %123 {offsets = [0, 192], sizes = [8, 64], strides = [1, 1]} : vector<8x256xf32> to vector<8x64xf32>
    %131 = math.tanh %130 : vector<8x64xf32>
    %132 = vector.extract_strided_slice %129 {offsets = [0, 0], sizes = [8, 64], strides = [1, 1]} : vector<8x192xf32> to vector<8x64xf32>
    %133 = vector.extract_strided_slice %129 {offsets = [0, 64], sizes = [8, 64], strides = [1, 1]} : vector<8x192xf32> to vector<8x64xf32>
    %134 = vector.extract_strided_slice %129 {offsets = [0, 128], sizes = [8, 64], strides = [1, 1]} : vector<8x192xf32> to vector<8x64xf32>
    %135 = arith.mulf %133, %115 : vector<8x64xf32>
    %136 = arith.mulf %132, %131 : vector<8x64xf32>
    %137 = arith.addf %135, %136 : vector<8x64xf32>
    %138 = math.tanh %137 : vector<8x64xf32>
    %139 = arith.mulf %134, %138 : vector<8x64xf32>
    %c6_i32 = arith.constant 6 : i32
    %c8_i32_32 = arith.constant 8 : i32
    %140 = arith.muli %c6_i32, %c8_i32_32 : i32
    %141 = tpu.assume_multiple %140, 8 : i32
    %142 = arith.index_cast %141 : i32 to index
    %c0_33 = arith.constant 0 : index
    %143 = vector.load %arg8[%142, %c0_33] : memref<64x256xf32, #tpu.memory_space<vmem>>, vector<8x256xf32>
    %cst_34 = arith.constant dense<0.000000e+00> : vector<8x256xf32>
    %144 = tpu.matmul %139, %7, %cst_34 {dimension_numbers = #tpu.dot_dimension_numbers<[1], [0], [0], [1], [0, 0, 1, 1], [], []>} : vector<8x64xf32>, vector<64x256xf32>, vector<8x256xf32> -> vector<8x256xf32>
    %145 = arith.addf %143, %144 : vector<8x256xf32>
    %146 = vector.extract_strided_slice %145 {offsets = [0, 0], sizes = [8, 192], strides = [1, 1]} : vector<8x256xf32> to vector<8x192xf32>
    %147 = arith.negf %146 : vector<8x192xf32>
    %148 = math.exp %147 : vector<8x192xf32>
    %cst_35 = arith.constant 1.000000e+00 : f32
    %149 = vector.broadcast %cst_35 : f32 to vector<8x192xf32>
    %150 = arith.addf %149, %148 : vector<8x192xf32>
    %151 = arith.divf %149, %150 : vector<8x192xf32>
    %152 = vector.extract_strided_slice %145 {offsets = [0, 192], sizes = [8, 64], strides = [1, 1]} : vector<8x256xf32> to vector<8x64xf32>
    %153 = math.tanh %152 : vector<8x64xf32>
    %154 = vector.extract_strided_slice %151 {offsets = [0, 0], sizes = [8, 64], strides = [1, 1]} : vector<8x192xf32> to vector<8x64xf32>
    %155 = vector.extract_strided_slice %151 {offsets = [0, 64], sizes = [8, 64], strides = [1, 1]} : vector<8x192xf32> to vector<8x64xf32>
    %156 = vector.extract_strided_slice %151 {offsets = [0, 128], sizes = [8, 64], strides = [1, 1]} : vector<8x192xf32> to vector<8x64xf32>
    %157 = arith.mulf %155, %137 : vector<8x64xf32>
    %158 = arith.mulf %154, %153 : vector<8x64xf32>
    %159 = arith.addf %157, %158 : vector<8x64xf32>
    %160 = math.tanh %159 : vector<8x64xf32>
    %161 = arith.mulf %156, %160 : vector<8x64xf32>
    %c7_i32 = arith.constant 7 : i32
    %c8_i32_36 = arith.constant 8 : i32
    %162 = arith.muli %c7_i32, %c8_i32_36 : i32
    %163 = tpu.assume_multiple %162, 8 : i32
    %164 = arith.index_cast %163 : i32 to index
    %c0_37 = arith.constant 0 : index
    %165 = vector.load %arg8[%164, %c0_37] : memref<64x256xf32, #tpu.memory_space<vmem>>, vector<8x256xf32>
    %cst_38 = arith.constant dense<0.000000e+00> : vector<8x256xf32>
    %166 = tpu.matmul %161, %7, %cst_38 {dimension_numbers = #tpu.dot_dimension_numbers<[1], [0], [0], [1], [0, 0, 1, 1], [], []>} : vector<8x64xf32>, vector<64x256xf32>, vector<8x256xf32> -> vector<8x256xf32>
    %167 = arith.addf %165, %166 : vector<8x256xf32>
    %168 = vector.extract_strided_slice %167 {offsets = [0, 0], sizes = [8, 192], strides = [1, 1]} : vector<8x256xf32> to vector<8x192xf32>
    %169 = arith.negf %168 : vector<8x192xf32>
    %170 = math.exp %169 : vector<8x192xf32>
    %cst_39 = arith.constant 1.000000e+00 : f32
    %171 = vector.broadcast %cst_39 : f32 to vector<8x192xf32>
    %172 = arith.addf %171, %170 : vector<8x192xf32>
    %173 = arith.divf %171, %172 : vector<8x192xf32>
    %174 = vector.extract_strided_slice %167 {offsets = [0, 192], sizes = [8, 64], strides = [1, 1]} : vector<8x256xf32> to vector<8x64xf32>
    %175 = math.tanh %174 : vector<8x64xf32>
    %176 = vector.extract_strided_slice %173 {offsets = [0, 0], sizes = [8, 64], strides = [1, 1]} : vector<8x192xf32> to vector<8x64xf32>
    %177 = vector.extract_strided_slice %173 {offsets = [0, 64], sizes = [8, 64], strides = [1, 1]} : vector<8x192xf32> to vector<8x64xf32>
    %178 = vector.extract_strided_slice %173 {offsets = [0, 128], sizes = [8, 64], strides = [1, 1]} : vector<8x192xf32> to vector<8x64xf32>
    %179 = arith.mulf %177, %159 : vector<8x64xf32>
    %180 = arith.mulf %176, %175 : vector<8x64xf32>
    %181 = arith.addf %179, %180 : vector<8x64xf32>
    %182 = math.tanh %181 : vector<8x64xf32>
    %183 = arith.mulf %178, %182 : vector<8x64xf32>
    %c7_i32_40 = arith.constant 7 : i32
    %c0_41 = arith.constant 0 : index
    %c0_42 = arith.constant 0 : index
    %184 = vector.load %arg4[%c0_41, %c0_42] : memref<64x128xf32, #tpu.memory_space<vmem>>, vector<64x128xf32>
    %cst_43 = arith.constant dense<0.000000e+00> : vector<8x128xf32>
    %185 = tpu.matmul %29, %184, %cst_43 {dimension_numbers = #tpu.dot_dimension_numbers<[1], [0], [0], [1], [0, 0, 1, 1], [], []>} : vector<8x64xf32>, vector<64x128xf32>, vector<8x128xf32> -> vector<8x128xf32>
    %c0_44 = arith.constant 0 : index
    %c0_45 = arith.constant 0 : index
    %186 = vector.load %arg5[%c0_44, %c0_45] : memref<64x128xf32, #tpu.memory_space<vmem>>, vector<64x128xf32>
    %cst_46 = arith.constant dense<0.000000e+00> : vector<8x128xf32>
    %187 = tpu.matmul %183, %186, %cst_46 {dimension_numbers = #tpu.dot_dimension_numbers<[1], [0], [0], [1], [0, 0, 1, 1], [], []>} : vector<8x64xf32>, vector<64x128xf32>, vector<8x128xf32> -> vector<8x128xf32>
    %188 = arith.addf %185, %187 : vector<8x128xf32>
    %c0_47 = arith.constant 0 : index
    %c0_48 = arith.constant 0 : index
    %189 = vector.load %arg6[%c0_47, %c0_48] : memref<1x128xf32, #tpu.memory_space<vmem>>, vector<1x128xf32>
    %190 = vector.broadcast %189 : vector<1x128xf32> to vector<8x128xf32>
    %191 = arith.addf %188, %190 : vector<8x128xf32>
    %c0_49 = arith.constant 0 : index
    %c0_50 = arith.constant 0 : index
    %192 = vector.load %arg7[%c0_49, %c0_50] : memref<8x128xf32, #tpu.memory_space<vmem>>, vector<8x128xf32>
    tpu.vector_store %arg7[%c0_49, %c0_50], %191 {strides = array<i32>} : memref<8x128xf32, #tpu.memory_space<vmem>>, vector<8x128xf32>,
    return
  }
}

</mosaic_0001>

<bundles_post_ra>
// kernel: tpu_custom_call.1
= control target key start
LH: loop header
LB: loop body
LE: loop exit
PB: predicated region body
PF: predicated region fallthrough
CT: control target
= control target key end

     0   :  { %12 = vsyncpa [#allocation4], 0  ;;  %s2192_s0 = inlined_call_operand.vmem [shape: f32[64,32], index: 0, kind: input, shape index: {}]   ;;  %s2193_s1 = inlined_call_operand.vmem [shape: f32[32,256], index: 1, kind: input, shape index: {}]   ;;  %s2194_s2 = inlined_call_operand.vmem [shape: f32[1,256], index: 2, kind: input, shape index: {}]   ;;  %s2195_s3 = inlined_call_operand.hbm [shape: f32[64,256], index: 3, kind: input, shape index: {}]   ;;  %s2196_s4 = inlined_call_operand.hbm [shape: f32[64,128], index: 4, kind: input, shape index: {}]   ;;  %s2197_s5 = inlined_call_operand.hbm [shape: f32[64,128], index: 5, kind: input, shape index: {}]   ;;  %s2198_s6 = inlined_call_operand.vmem [shape: f32[1,128], index: 6, kind: input, shape index: {}]   ;;  %s2199_s7 = inlined_call_operand.hbm [shape: f32[8,128], index: 7, kind: output, shape index: {}]  }
   0x1   :  { %13 = vsyncpa [#allocation7], 0 }
   0x2   :  { %14 = vsyncpa [#allocation5], 0  ;;  %s1830_s24 = smov [#allocation6]   ;;  %s1736_s28 = scalar_lea.hbm %s2196_s4, 1024 }
   0x3   :  { %s38_s25 = sshll.u32 %s1830_s24, 4  ;;  %p1737_p0 = scmp.ne.s32.totalorder %s2196_s4, %s1736_s28  ;;  %s39_s25 = int_to_ptr.vmem [resolvable:$true] %s38_s25 }
   0x4   :  { %p1740_p1 = scmp.lt.u32.totalorder %s1736_s28, %s2196_s4 }
   0x6   :  { %p1742_p2 = pnand %p1740_p1, %p1737_p0 }
   0x8   :  { %1745 = shalt.err (!%p1742_p2)
}
   0x9   :  { %s1746_s10 = scalar_lea.vmem %s39_s25, 1024  ;;  %p1751_p4 = scmp.lt.s32.totalorder %s39_s25, %s39_s25 }
   0xa   :  { %p1747_p3 = scmp.ne.s32.totalorder %s39_s25, %s1746_s10  ;;  %p1752_p5 = scmp.lt.s32.totalorder %s1746_s10, %s1746_s10 }
   0xc   :  { %p1753_p6 = por %p1752_p5, %p1751_p4 }
   0xe   :  { %p1754_p7 = pnand %p1753_p6, %p1747_p3 }
  0x10   :  { %1757 = shalt.err (!%p1754_p7)
}
  0x11   :  { %s1831_s11 = smov 128   ;;  %s1832_s12 = smov 8  }
  0x12   :  { %44 = dma.hbm_to_vmem [thread:$0]  %s2196_s4, 1024, %s39_s25, [#allocation7], %s1831_s11, %s1831_s11, %s1832_s12  }
  0x13   :  { %s1833_s15 = smov [#allocation3]   ;;  %s1758_s19 = scalar_lea.hbm %s2195_s3, 2048 }
  0x14   :  { %s26_s16 = sshll.u32 %s1833_s15, 4  ;;  %p1759_p8 = scmp.ne.s32.totalorder %s2195_s3, %s1758_s19  ;;  %s27_s16 = int_to_ptr.vmem [resolvable:$true] %s26_s16 }
  0x15   :  { %p1762_p9 = scmp.lt.u32.totalorder %s1758_s19, %s2195_s3 }
  0x17   :  { %p1764_p10 = pnand %p1762_p9, %p1759_p8 }
  0x19   :  { %1767 = shalt.err (!%p1764_p10)
}
  0x1a   :  { %s1768_s24 = scalar_lea.vmem %s27_s16, 2048  ;;  %p1773_p12 = scmp.lt.s32.totalorder %s27_s16, %s27_s16 }
  0x1b   :  { %p1769_p11 = scmp.ne.s32.totalorder %s27_s16, %s1768_s24  ;;  %p1774_p13 = scmp.lt.s32.totalorder %s1768_s24, %s1768_s24 }
  0x1d   :  { %p1775_p0 = por %p1774_p13, %p1773_p12 }
  0x1f   :  { %p1776_p1 = pnand %p1775_p0, %p1769_p11 }
  0x21   :  { %1779 = shalt.err (!%p1776_p1)
}
  0x22   :  { %s1834_s4 = smov 256   ;;  %s1835_s25 = smov 16  }
  0x23   :  { %32 = dma.hbm_to_vmem [thread:$0]  %s2195_s3, 2048, %s27_s16, [#allocation4], %s1834_s4, %s1834_s4, %s1835_s25  }
  0x24   :  { %s1836_s28 = smov [#allocation8]   ;;  %s1780_s9 = scalar_lea.hbm %s2197_s5, 1024 }
  0x25   :  { %s50_s29 = sshll.u32 %s1836_s28, 4  ;;  %p1781_p2 = scmp.ne.s32.totalorder %s2197_s5, %s1780_s9  ;;  %s51_s29 = int_to_ptr.vmem [resolvable:$true] %s50_s29 }
  0x26   :  { %p1784_p3 = scmp.lt.u32.totalorder %s1780_s9, %s2197_s5 }
  0x28   :  { %p1786_p4 = pnand %p1784_p3, %p1781_p2 }
  0x2a   :  { %1789 = shalt.err (!%p1786_p4)
}
  0x2b   :  { %s1790_s17 = scalar_lea.vmem %s51_s29, 1024  ;;  %p1795_p6 = scmp.lt.s32.totalorder %s51_s29, %s51_s29 }
  0x2c   :  { %p1791_p5 = scmp.ne.s32.totalorder %s51_s29, %s1790_s17  ;;  %p1796_p7 = scmp.lt.s32.totalorder %s1790_s17, %s1790_s17 }
  0x2e   :  { %p1797_p8 = por %p1796_p7, %p1795_p6 }
  0x30   :  { %p1798_p9 = pnand %p1797_p8, %p1791_p5 }
  0x32   :  { %1801 = shalt.err (!%p1798_p9)
}
  0x33   :  { %56 = dma.hbm_to_vmem [thread:$0]  %s2197_s5, 1024, %s51_s29, [#allocation7], %s1831_s11, %s1831_s11, %s1832_s12  }
  0x34   :  { %1824 = dma.done.wait [#allocation4], 2048  }
  0x35   :  { %1825 = vsyncadd [#allocation4], 4294965248 }
  0x36   :  { %1826 = dma.done.wait [#allocation7], 2048  }
  0x37   :  { %1827 = vsyncadd [#allocation7], 4294965248  ;;  %v1837_v0 = vmov 0.0   ;;  %v77_v1 = vld [vmem:[%s2193_s1 + $0x8] sm:$0xff]  ;;  %v79_v2 = vld [vmem:[%s2193_s1 + $0x18] sm:$0xff]  ;;  %vm96_vm0 = vcmask 261120   ;;  %v86_v51 = vlaneseq }
  0x38   :  { %185 = vmatprep.mubr.f32.mxu1 %v1837_v0  ;;  %561 = vmatprep.mubr.f32.mxu0 %v1837_v0  ;;  %v76_v3 = vld [vmem:[%s2193_s1] sm:$0xff]  ;;  %v1436_v4 = vpack.c.bf16 %v79_v2, %v77_v1  ;;  %v78_v5 = vld [vmem:[%s2193_s1 + $0x10] sm:$0xff]  ;;  %v81_v6 = vld [vmem:[%s2193_s1 + $0x28] sm:$0xff]  ;;  %s1838_s5 = smov 64   ;;  %vm271_vm1 = vcmask 523264   ;;  %vm1840_vm2 = vmmov 0  }
  0x39   :  { %v83_v7 = vld [vmem:[%s2193_s1 + $0x38] sm:$0xff]  ;;  %v1438_v8 = vpack.c.bf16 %v78_v5, %v76_v3  ;;  %v80_v10 = vld [vmem:[%s2193_s1 + $0x20] sm:$0xff]  ;;  %v82_v11 = vld [vmem:[%s2193_s1 + $0x30] sm:$0xff]  ;;  %v87_v54 = vshrl.u32 %v86_v51, 7  ;;  %s1841_s12 = smov [#allocation9]  }
  0x3a   :  { %v1440_v9 = vpack.c.bf16 %v83_v7, %v81_v6  ;;  %1437 = vmatprep.subr.bf16.mxu1 %v1436_v4  ;;  %v251_v12 = vld [vmem:[#allocation3 + $0x8] sm:$0xff]  ;;  %v253_v13 = vld [vmem:[#allocation3 + $0x18] sm:$0xff]  ;;  %v250_v14 = vld [vmem:[#allocation3] sm:$0xff]  ;;  %v1442_v15 = vpack.c.bf16 %v82_v11, %v80_v10  ;;  %s1329_s24 = sshll.u32 %s1841_s12, 4  ;;  %s1330_s24 = int_to_ptr.vmem [resolvable:$true] %s1329_s24 }
  0x3b   :  { %1439 = vmatpush1.bf16.msra.mxu1 %v1438_v8  ;;  %v1950_v16 = vpack.c.bf16 %v253_v13, %v251_v12  ;;  %v252_v17 = vld [vmem:[#allocation3 + $0x10] sm:$0xff]  ;;  %v255_v19 = vld [vmem:[#allocation3 + $0x28] sm:$0xff]  ;;  %v257_v20 = vld [vmem:[#allocation3 + $0x38] sm:$0xff]  ;;  %v92_v57 = vsub.s32 1, %v87_v54  ;;  %v88_v3 = vsub.s32 0, %v87_v54  ;;  %s1802_s4 = scalar_lea.vmem %s1330_s24, 128  ;;  %p1807_p11 = scmp.lt.s32.totalorder %s1330_s24, %s1330_s24 }
  0x3c   :  { %1441 = vmatprep.subr.bf16.mxu1 %v1440_v9  ;;  %v1952_v18 = vpack.c.bf16 %v252_v17, %v250_v14  ;;  %v1954_v21 = vpack.c.bf16 %v257_v20, %v255_v19  ;;  %v254_v22 = vld [vmem:[#allocation3 + $0x20] sm:$0xff]  ;;  %v256_v23 = vld [vmem:[#allocation3 + $0x30] sm:$0xff]  ;;  %v259_v25 = vld [vmem:[#allocation3 + $0x48] sm:$0xff]  ;;  %p1803_p10 = scmp.ne.s32.totalorder %s1330_s24, %s1802_s4  ;;  %p1808_p12 = scmp.lt.s32.totalorder %s1802_s4, %s1802_s4 }
  0x3d   :  { %1477 = vmatprep.subr.bf16.mxu0 %v1950_v16  ;;  %v68_v24 = vld [vmem:[%s2192_s0] sm:$0xff]  ;;  %v261_v26 = vld [vmem:[#allocation3 + $0x58] sm:$0xff]  ;;  %v1963_v27 = vpack.c.bf16 %v256_v23, %v254_v22  ;;  %v260_v29 = vld [vmem:[#allocation3 + $0x50] sm:$0xff] }
  0x3e   :  { %1479 = vmatpush1.bf16.msra.mxu0 %v1952_v18  ;;  %v258_v28 = vld [vmem:[#allocation3 + $0x40] sm:$0xff]  ;;  %v1966_v30 = vpack.c.bf16 %v261_v26, %v259_v25  ;;  %v69_v31 = vld [vmem:[%s2192_s0 + $0x8] sm:$0xff]  ;;  %v265_v33 = vld [vmem:[#allocation3 + $0x78] sm:$0xff]  ;;  %p1809_p13 = por %p1808_p12, %p1807_p11 }
  0x3f   :  { %1443 = vmatpush1.bf16.msra.mxu1 %v1442_v15  ;;  %1481 = vmatprep.subr.bf16.mxu0 %v1954_v21  ;;  %v263_v32 = vld [vmem:[#allocation3 + $0x68] sm:$0xff]  ;;  %v1975_v34 = vpack.c.bf16 %v260_v29, %v258_v28  ;;  %v262_v35 = vld [vmem:[#allocation3 + $0x60] sm:$0xff]  ;;  %v264_v36 = vld [vmem:[#allocation3 + $0x70] sm:$0xff] }
  0x40   :  { %1445 = vmatprep.subr.bf16.mxu1 %v1950_v16  ;;  %v1979_v37 = vpack.c.bf16 %v265_v33, %v263_v32  ;;  %v70_v38 = vld [vmem:[%s2192_s0 + $0x10] sm:$0xff]  ;;  %v1988_v39 = vpack.c.bf16 %v264_v36, %v262_v35  ;;  %v71_v40 = vld [vmem:[%s2192_s0 + $0x18] sm:$0xff]  ;;  %v72_v41 = vld [vmem:[%s2192_s0 + $0x20] sm:$0xff]  ;;  %p1810_p0 = pnand %p1809_p13, %p1803_p10 }
  0x41   :  { %v73_v42 = vld [vmem:[%s2192_s0 + $0x28] sm:$0xff]  ;;  %v74_v43 = vld [vmem:[%s2192_s0 + $0x30] sm:$0xff]  ;;  %v75_v44 = vld [vmem:[%s2192_s0 + $0x38] sm:$0xff] }
  0x42   :  { %1346 = vmatmul.mubr.msk.f32.vlgmr.msra.gmra.mrb[0].mxu1 %vm96_vm0, %v68_v24  ;;  %1483 = vmatpush1.bf16.msra.mxu0 %v1963_v27  ;;  %v84_v59 = vld [vmem:[%s2194_s2] sm:$0x3] }
  0x43   :  { %1447 = vmatpush1.bf16.msra.mxu1 %v1952_v18  ;;  %191 = vmatprep.mubr.f32.mxu1 %v1837_v0  ;;  %v2060_v61 = vrot.slane %v84_v59, %v92_v57  ;;  %v2064_v4 = vrot.slane %v84_v59, %v88_v3 }
  0x44   :  { %1449 = vmatprep.subr.bf16.mxu1 %v1954_v21  ;;  %1485 = vmatprep.subr.bf16.mxu0 %v1966_v30 }
  0x46   :  { %1347 = vmatmul.mubr.msk.f32.gmra.mrb[2].mxu1 %vm96_vm0, %v69_v31  ;;  %1487 = vmatpush1.bf16.msra.mxu0 %v1975_v34 }
  0x47   :  { %197 = vmatprep.mubr.f32.mxu1 %v1837_v0  ;;  %1451 = vmatpush1.bf16.msra.mxu1 %v1963_v27 }
  0x48   :  { %1453 = vmatprep.subr.bf16.mxu1 %v1966_v30  ;;  %1489 = vmatprep.subr.bf16.mxu0 %v1979_v37 }
  0x4a   :  { %1348 = vmatmul.mubr.msk.f32.gmra.mrb[4].mxu1 %vm96_vm0, %v70_v38  ;;  %1491 = vmatpush1.bf16.msra.mxu0 %v1988_v39 }
  0x4b   :  { %203 = vmatprep.mubr.f32.mxu1 %v1837_v0  ;;  %1455 = vmatpush1.bf16.msra.mxu1 %v1975_v34 }
  0x4c   :  { %1457 = vmatprep.subr.bf16.mxu1 %v1979_v37  ;;  %1493 = vmatprep.subr.bf16.mxu0 %v1950_v16 }
  0x4e   :  { %1349 = vmatmul.mubr.msk.f32.gmra.mrb[6].mxu1 %vm96_vm0, %v71_v40 }
  0x4f   :  { %209 = vmatprep.mubr.f32.mxu1 %v1837_v0  ;;  %1459 = vmatpush1.bf16.msra.mxu1 %v1988_v39 }
  0x50   :  { %1461 = vmatprep.subr.bf16.mxu1 %v1950_v16 }
  0x52   :  { %1350 = vmatmul.mubr.msk.f32.gmra.mrb[8].mxu1 %vm96_vm0, %v72_v41 }
  0x53   :  { %215 = vmatprep.mubr.f32.mxu1 %v1837_v0 }
  0x56   :  { %1351 = vmatmul.mubr.msk.f32.gmra.mrb[10].mxu1 %vm96_vm0, %v73_v42 }
  0x57   :  { %221 = vmatprep.mubr.f32.mxu1 %v1837_v0 }
  0x5a   :  { %1352 = vmatmul.mubr.msk.f32.gmra.mrb[12].mxu1 %vm96_vm0, %v74_v43 }
  0x5b   :  { %227 = vmatprep.mubr.f32.mxu1 %v1837_v0 }
  0x5e   :  { %1353 = vmatmul.mubr.msk.f32.gmra.mrb[14].mxu1 %vm96_vm0, %v75_v44 }
  0x5f   :  { %339 = vmatprep.mubr.f32.mxu1 %v1837_v0 }
  0x62   :  { %340 = vmatmul.mubr.f32.vlgmr.msra.gmra.mrb[0].mxu1 %v1837_v0 }
  0x63   :  { %1463 = vmatpush1.bf16.msra.mxu1 %v1952_v18  ;;  %450 = vmatprep.mubr.f32.mxu1 %v1837_v0 }
  0x64   :  { %1465 = vmatprep.subr.bf16.mxu1 %v1954_v21 }
  0x67   :  { %1467 = vmatpush1.bf16.msra.mxu1 %v1963_v27 }
  0x68   :  { %1469 = vmatprep.subr.bf16.mxu1 %v1966_v30 }
  0x6b   :  { %1471 = vmatpush1.bf16.msra.mxu1 %v1975_v34 }
  0x6c   :  { %1473 = vmatprep.subr.bf16.mxu1 %v1979_v37 }
  0x6f   :  { %1475 = vmatpush1.bf16.msra.mxu1 %v1988_v39 }
 0x11d   :  { %v2033_v45 = vpop.f32.mrb[4].mxu1 }
 0x11e   :  { %v2035_v46 = vpop.f32.mrb[5].mxu1 }
 0x121   :  { %v2037_v47 = vpop.f32.mrb[6].mxu1 }
 0x122   :  { %v2039_v48 = vpop.f32.mrb[7].mxu1 }
 0x125   :  { %v2041_v49 = vpop.f32.mrb[8].mxu1 }
 0x126   :  { %v2043_v50 = vpop.f32.mrb[9].mxu1 }
 0x129   :  { %v2045_v52 = vpop.f32.mrb[10].mxu1 }
 0x12a   :  { %v2047_v53 = vpop.f32.mrb[11].mxu1 }
 0x12d   :  { %v2049_v55 = vpop.f32.mrb[12].mxu1 }
 0x12e   :  { %v2051_v56 = vpop.f32.mrb[13].mxu1 }
 0x131   :  { %v2053_v58 = vpop.f32.mrb[14].mxu1 }
 0x132   :  { %v2058_v60 = vpop.f32.mrb[15].mxu1 }
 0x135   :  { %v341_v62 = vpop.f32.mrb[0].mxu1 }
 0x136   :  { %v343_v63 = vpop.f32.mrb[1].mxu1  ;;  %v1596_v5 = vadd.f32 %v341_v62, %v2064_v4 }
 0x137   :  { %v1597_v1 = vadd.f32 %v343_v63, %v2060_v61 }
 0x138   :  { %v1354_v6 = vmul.f32 -1.442695, %v1596_v5 }
 0x139   :  { %1640 = vtanh.f32 %v1597_v1  ;;  %v1355_v17 = vmul.f32 -1.442695, %v1597_v1  ;;  %v200_v1 = vadd.f32 %v2033_v45, %v2064_v4 }
 0x13a   :  { %1642 = vpow2.f32 %v1354_v6 }
 0x143   :  { %v1641_v2 = vpop.eup %1640 }
 0x144   :  { %363 = vrot.lane.b32.xlu0 %v1641_v2, %s1838_s5  ;;  %v1643_v7 = vpop.eup %1642  ;;  %v202_v2 = vadd.f32 %v2035_v46, %v2060_v61 }
 0x145   :  { %v354_v8 = vadd.f32 1.0, %v1643_v7 }
 0x147   :  { %1644 = vrcp.f32 %v354_v8 }
 0x151   :  { %v1645_v9 = vpop.eup %1644 }
 0x152   :  { %v361_v12 = vmul.f32 0.0, %v1645_v9 }
 0x1b6   :  { %v364_v10 = vpop.permute.xlu0 %363 }
 0x1b7   :  { %v366_v11 = vmul.f32 %v1645_v9, %v364_v10 }
 0x1b9   :  { %368 = vrot.lane.b32.xlu0 %v366_v11, %s1838_s5 }
 0x22b   :  { %v369_v13 = vpop.permute.xlu0 %368 }
 0x22c   :  { %v371_v14 = vadd.f32 %v369_v13, %v361_v12 }
 0x22e   :  { %1646 = vtanh.f32 %v371_v14 }
 0x22f   :  { %1648 = vpow2.f32 %v1355_v17 }
 0x238   :  { %v1647_v15 = vpop.eup %1646 }
 0x239   :  { %374 = vrot.lane.b32.xlu1 %v1647_v15, %s1838_s5  ;;  %v1649_v19 = vpop.eup %1648 }
 0x23a   :  { %v355_v20 = vadd.f32 1.0, %v1649_v19 }
 0x23c   :  { %1650 = vrcp.f32 %v355_v20 }
 0x246   :  { %v1651_v22 = vpop.eup %1650 }
 0x2ab   :  { %v375_v23 = vpop.permute.xlu1 %374 }
 0x2ac   :  { %v2069_v24 = vmul.f32 %v1651_v22, %v375_v23 }
 0x2ae   :  { %1356 = vmatmul.mubr.msk.f32.vlgmr.msra.gmra.mrb[2].mxu1 %vm271_vm1, %v2069_v24 }
 0x2af   :  { %1414 = vmatprep.mubr.msk.f32.mxu1 %vm1840_vm2, %v1837_v0 }
 0x381   :  { %v452_v25 = vpop.f32.mrb[2].mxu1 }
 0x382   :  { %v454_v26 = vpop.f32.mrb[3].mxu1  ;;  %v1598_v31 = vadd.f32 %v452_v25, %v2064_v4 }
 0x383   :  { %v1599_v28 = vadd.f32 %v454_v26, %v2060_v61 }
 0x384   :  { %v1357_v32 = vmul.f32 -1.442695, %v1598_v31 }
 0x385   :  { %1652 = vtanh.f32 %v1599_v28  ;;  %v1358_v51 = vmul.f32 -1.442695, %v1599_v28  ;;  %v206_v28 = vadd.f32 %v2037_v47, %v2064_v4 }
 0x386   :  { %1654 = vpow2.f32 %v1357_v32 }
 0x38f   :  { %v1653_v29 = vpop.eup %1652 }
 0x390   :  { %474 = vrot.lane.b32.xlu1 %v1653_v29, %s1838_s5  ;;  %v1655_v33 = vpop.eup %1654  ;;  %v208_v29 = vadd.f32 %v2039_v48, %v2060_v61 }
 0x391   :  { %v465_v35 = vadd.f32 1.0, %v1655_v33 }
 0x393   :  { %1656 = vrcp.f32 %v465_v35 }
 0x39d   :  { %v1657_v36 = vpop.eup %1656 }
 0x39e   :  { %v472_v41 = vmul.f32 %v1657_v36, %v371_v14 }
 0x402   :  { %v475_v38 = vpop.permute.xlu1 %474 }
 0x403   :  { %v477_v40 = vmul.f32 %v1657_v36, %v475_v38 }
 0x405   :  { %479 = vrot.lane.b32.xlu0 %v477_v40, %s1838_s5 }
 0x477   :  { %v480_v42 = vpop.permute.xlu0 %479 }
 0x478   :  { %v482_v43 = vadd.f32 %v480_v42, %v472_v41 }
 0x47a   :  { %1658 = vtanh.f32 %v482_v43 }
 0x47b   :  { %1660 = vpow2.f32 %v1358_v51 }
 0x484   :  { %v1659_v44 = vpop.eup %1658 }
 0x485   :  { %485 = vrot.lane.b32.xlu1 %v1659_v44, %s1838_s5  ;;  %v1661_v54 = vpop.eup %1660 }
 0x486   :  { %v466_v57 = vadd.f32 1.0, %v1661_v54 }
 0x488   :  { %1662 = vrcp.f32 %v466_v57 }
 0x492   :  { %v1663_v59 = vpop.eup %1662 }
 0x4f7   :  { %v486_v62 = vpop.permute.xlu1 %485 }
 0x4f8   :  { %v488_v63 = vmul.f32 %v1663_v59, %v486_v62 }
 0x4fa   :  { %1359 = vmatmul.mubr.msk.f32.vlgmr.msra.gmra.mrb[0].mxu0 %vm271_vm1, %v488_v63 }
 0x4fb   :  { %1495 = vmatpush1.bf16.msra.mxu0 %v1952_v18  ;;  %672 = vmatprep.mubr.f32.mxu0 %v1837_v0 }
 0x4fc   :  { %1497 = vmatprep.subr.bf16.mxu0 %v1954_v21 }
 0x4ff   :  { %1499 = vmatpush1.bf16.msra.mxu0 %v1963_v27 }
 0x500   :  { %1501 = vmatprep.subr.bf16.mxu0 %v1966_v30 }
 0x503   :  { %1503 = vmatpush1.bf16.msra.mxu0 %v1975_v34 }
 0x504   :  { %1505 = vmatprep.subr.bf16.mxu0 %v1979_v37 }
 0x507   :  { %1507 = vmatpush1.bf16.msra.mxu0 %v1988_v39 }
 0x508   :  { %1509 = vmatprep.subr.bf16.mxu0 %v1950_v16 }
 0x5cd   :  { %v563_v3 = vpop.f32.mrb[0].mxu0 }
 0x5ce   :  { %v568_v5 = vadd.f32 %v563_v3, %v200_v1  ;;  %v565_v6 = vpop.f32.mrb[1].mxu0  ;;  %v212_v3 = vadd.f32 %v2041_v49, %v2064_v4 }
 0x5cf   :  { %v569_v7 = vadd.f32 %v565_v6, %v202_v2 }
 0x5d0   :  { %v1360_v9 = vmul.f32 -1.442695, %v568_v5  ;;  %v214_v5 = vadd.f32 %v2043_v50, %v2060_v61 }
 0x5d1   :  { %1664 = vtanh.f32 %v569_v7  ;;  %v1361_v19 = vmul.f32 -1.442695, %v569_v7 }
 0x5d2   :  { %1666 = vpow2.f32 %v1360_v9 }
 0x5db   :  { %v1665_v8 = vpop.eup %1664 }
 0x5dc   :  { %585 = vrot.lane.b32.xlu0 %v1665_v8, %s1838_s5  ;;  %v1667_v10 = vpop.eup %1666 }
 0x5dd   :  { %v576_v11 = vadd.f32 1.0, %v1667_v10 }
 0x5df   :  { %1668 = vrcp.f32 %v576_v11 }
 0x5e9   :  { %v1669_v12 = vpop.eup %1668 }
 0x5ea   :  { %v583_v45 = vmul.f32 %v1669_v12, %v482_v43 }
 0x64e   :  { %v586_v13 = vpop.permute.xlu0 %585 }
 0x64f   :  { %v588_v14 = vmul.f32 %v1669_v12, %v586_v13 }
 0x651   :  { %590 = vrot.lane.b32.xlu1 %v588_v14, %s1838_s5 }
 0x6c3   :  { %v591_v46 = vpop.permute.xlu1 %590 }
 0x6c4   :  { %v593_v15 = vadd.f32 %v591_v46, %v583_v45 }
 0x6c6   :  { %1670 = vtanh.f32 %v593_v15 }
 0x6c7   :  { %1672 = vpow2.f32 %v1361_v19 }
 0x6d0   :  { %v1671_v17 = vpop.eup %1670 }
 0x6d1   :  { %596 = vrot.lane.b32.xlu0 %v1671_v17, %s1838_s5  ;;  %v1673_v20 = vpop.eup %1672 }
 0x6d2   :  { %v577_v22 = vadd.f32 1.0, %v1673_v20 }
 0x6d4   :  { %1674 = vrcp.f32 %v577_v22 }
 0x6de   :  { %v1675_v23 = vpop.eup %1674 }
 0x743   :  { %v597_v25 = vpop.permute.xlu0 %596 }
 0x744   :  { %v599_v26 = vmul.f32 %v1675_v23, %v597_v25 }
 0x746   :  { %1362 = vmatmul.mubr.msk.f32.vlgmr.msra.gmra.mrb[2].mxu0 %vm271_vm1, %v599_v26 }
 0x747   :  { %1511 = vmatpush1.bf16.msra.mxu0 %v1952_v18  ;;  %783 = vmatprep.mubr.f32.mxu0 %v1837_v0 }
 0x748   :  { %1513 = vmatprep.subr.bf16.mxu0 %v1954_v21 }
 0x74b   :  { %1515 = vmatpush1.bf16.msra.mxu0 %v1963_v27 }
 0x74c   :  { %1517 = vmatprep.subr.bf16.mxu0 %v1966_v30 }
 0x74f   :  { %1519 = vmatpush1.bf16.msra.mxu0 %v1975_v34 }
 0x750   :  { %1521 = vmatprep.subr.bf16.mxu0 %v1979_v37 }
 0x753   :  { %1523 = vmatpush1.bf16.msra.mxu0 %v1988_v39 }
 0x754   :  { %1525 = vmatprep.subr.bf16.mxu0 %v1950_v16 }
 0x819   :  { %v674_v31 = vpop.f32.mrb[2].mxu0 }
 0x81a   :  { %v679_v32 = vadd.f32 %v674_v31, %v206_v28  ;;  %v676_v33 = vpop.f32.mrb[3].mxu0  ;;  %v218_v28 = vadd.f32 %v2045_v52, %v2064_v4 }
 0x81b   :  { %v680_v35 = vadd.f32 %v676_v33, %v208_v29  ;;  %v220_v29 = vadd.f32 %v2047_v53, %v2060_v61 }
 0x81c   :  { %v1363_v38 = vmul.f32 -1.442695, %v679_v32 }
 0x81d   :  { %1676 = vtanh.f32 %v680_v35  ;;  %v1364_v57 = vmul.f32 -1.442695, %v680_v35 }
 0x81e   :  { %1678 = vpow2.f32 %v1363_v38 }
 0x827   :  { %v1677_v36 = vpop.eup %1676 }
 0x828   :  { %696 = vrot.lane.b32.xlu1 %v1677_v36, %s1838_s5  ;;  %v1679_v40 = vpop.eup %1678 }
 0x829   :  { %v687_v41 = vadd.f32 1.0, %v1679_v40 }
 0x82b   :  { %1680 = vrcp.f32 %v687_v41 }
 0x835   :  { %v1681_v42 = vpop.eup %1680 }
 0x836   :  { %v694_v47 = vmul.f32 %v1681_v42, %v593_v15 }
 0x89a   :  { %v697_v43 = vpop.permute.xlu1 %696 }
 0x89b   :  { %v699_v44 = vmul.f32 %v1681_v42, %v697_v43 }
 0x89d   :  { %701 = vrot.lane.b32.xlu0 %v699_v44, %s1838_s5 }
 0x90f   :  { %v702_v48 = vpop.permute.xlu0 %701 }
 0x910   :  { %v704_v51 = vadd.f32 %v702_v48, %v694_v47 }
 0x912   :  { %1682 = vtanh.f32 %v704_v51 }
 0x913   :  { %1684 = vpow2.f32 %v1364_v57 }
 0x91c   :  { %v1683_v54 = vpop.eup %1682 }
 0x91d   :  { %707 = vrot.lane.b32.xlu1 %v1683_v54, %s1838_s5  ;;  %v1685_v59 = vpop.eup %1684 }
 0x91e   :  { %v688_v62 = vadd.f32 1.0, %v1685_v59 }
 0x920   :  { %1686 = vrcp.f32 %v688_v62 }
 0x92a   :  { %v1687_v63 = vpop.eup %1686 }
 0x98f   :  { %v708_v1 = vpop.permute.xlu1 %707 }
 0x990   :  { %v710_v2 = vmul.f32 %v1687_v63, %v708_v1  ;;  %v224_v63 = vadd.f32 %v2049_v55, %v2064_v4 }
 0x992   :  { %1365 = vmatmul.mubr.msk.f32.vlgmr.msra.gmra.mrb[4].mxu0 %vm271_vm1, %v710_v2 }
 0x993   :  { %1527 = vmatpush1.bf16.msra.mxu0 %v1952_v18  ;;  %894 = vmatprep.mubr.f32.mxu0 %v1837_v0 }
 0x994   :  { %1529 = vmatprep.subr.bf16.mxu0 %v1954_v21 }
 0x997   :  { %1531 = vmatpush1.bf16.msra.mxu0 %v1963_v27 }
 0x998   :  { %1533 = vmatprep.subr.bf16.mxu0 %v1966_v30 }
 0x99b   :  { %1535 = vmatpush1.bf16.msra.mxu0 %v1975_v34 }
 0x99c   :  { %1537 = vmatprep.subr.bf16.mxu0 %v1979_v37 }
 0x99f   :  { %1539 = vmatpush1.bf16.msra.mxu0 %v1988_v39 }
 0x9a0   :  { %1541 = vmatprep.subr.bf16.mxu0 %v1950_v16 }
 0xa65   :  { %v785_v6 = vpop.f32.mrb[4].mxu0 }
 0xa66   :  { %v790_v7 = vadd.f32 %v785_v6, %v212_v3  ;;  %v787_v8 = vpop.f32.mrb[5].mxu0 }
 0xa67   :  { %v791_v9 = vadd.f32 %v787_v8, %v214_v5 }
 0xa68   :  { %v1366_v11 = vmul.f32 -1.442695, %v790_v7 }
 0xa69   :  { %1688 = vtanh.f32 %v791_v9  ;;  %v1367_v19 = vmul.f32 -1.442695, %v791_v9 }
 0xa6a   :  { %1690 = vpow2.f32 %v1366_v11 }
 0xa73   :  { %v1689_v10 = vpop.eup %1688 }
 0xa74   :  { %807 = vrot.lane.b32.xlu0 %v1689_v10, %s1838_s5  ;;  %v1691_v12 = vpop.eup %1690 }
 0xa75   :  { %v798_v13 = vadd.f32 1.0, %v1691_v12 }
 0xa77   :  { %1692 = vrcp.f32 %v798_v13 }
 0xa81   :  { %v1693_v14 = vpop.eup %1692 }
 0xa82   :  { %v805_v49 = vmul.f32 %v1693_v14, %v704_v51 }
 0xae6   :  { %v808_v45 = vpop.permute.xlu0 %807 }
 0xae7   :  { %v810_v46 = vmul.f32 %v1693_v14, %v808_v45  ;;  %v230_v45 = vadd.f32 %v2053_v58, %v2064_v4  ;;  %v1163_v58 = vld [vmem:[#allocation8] sm:$0xff]  ;;  %v1839_v4 = vmov 0.0|0.0  }
 0xae8   :  { %1572 = vmatprep.subr.bf16.mxu1 %v1839_v4 }
 0xae9   :  { %812 = vrot.lane.b32.xlu1 %v810_v46, %s1838_s5  ;;  %v232_v46 = vadd.f32 %v2058_v60, %v2060_v61  ;;  %v1164_v60 = vld [vmem:[#allocation8 + $0x8] sm:$0xff] }
 0xb5b   :  { %v813_v50 = vpop.permute.xlu1 %812 }
 0xb5c   :  { %v815_v15 = vadd.f32 %v813_v50, %v805_v49 }
 0xb5e   :  { %1694 = vtanh.f32 %v815_v15 }
 0xb5f   :  { %1696 = vpow2.f32 %v1367_v19 }
 0xb68   :  { %v1695_v17 = vpop.eup %1694 }
 0xb69   :  { %818 = vrot.lane.b32.xlu0 %v1695_v17, %s1838_s5  ;;  %v1697_v20 = vpop.eup %1696 }
 0xb6a   :  { %v799_v22 = vadd.f32 1.0, %v1697_v20 }
 0xb6c   :  { %1698 = vrcp.f32 %v799_v22 }
 0xb76   :  { %v1699_v23 = vpop.eup %1698 }
 0xbdb   :  { %v819_v25 = vpop.permute.xlu0 %818 }
 0xbdc   :  { %v821_v26 = vmul.f32 %v1699_v23, %v819_v25 }
 0xbde   :  { %1368 = vmatmul.mubr.msk.f32.vlgmr.msra.gmra.mrb[6].mxu0 %vm271_vm1, %v821_v26 }
 0xbdf   :  { %1543 = vmatpush1.bf16.msra.mxu0 %v1952_v18  ;;  %1005 = vmatprep.mubr.f32.mxu0 %v1837_v0 }
 0xbe0   :  { %1545 = vmatprep.subr.bf16.mxu0 %v1954_v21 }
 0xbe3   :  { %1547 = vmatpush1.bf16.msra.mxu0 %v1963_v27 }
 0xbe4   :  { %1549 = vmatprep.subr.bf16.mxu0 %v1966_v30 }
 0xbe7   :  { %1551 = vmatpush1.bf16.msra.mxu0 %v1975_v34 }
 0xbe8   :  { %1553 = vmatprep.subr.bf16.mxu0 %v1979_v37 }
 0xbeb   :  { %1555 = vmatpush1.bf16.msra.mxu0 %v1988_v39 }
 0xbec   :  { %1557 = vmatprep.subr.bf16.mxu0 %v1950_v16 }
 0xcb1   :  { %v896_v31 = vpop.f32.mrb[6].mxu0 }
 0xcb2   :  { %v901_v32 = vadd.f32 %v896_v31, %v218_v28  ;;  %v898_v33 = vpop.f32.mrb[7].mxu0  ;;  %v1166_v31 = vld [vmem:[#allocation8 + $0x18] sm:$0xff] }
 0xcb3   :  { %v902_v35 = vadd.f32 %v898_v33, %v220_v29  ;;  %v1573_v29 = vpack.c.bf16 %v1164_v60, %v1163_v58  ;;  %v1167_v33 = vld [vmem:[#allocation8 + $0x20] sm:$0xff] }
 0xcb4   :  { %v1369_v38 = vmul.f32 -1.442695, %v901_v32 }
 0xcb5   :  { %1700 = vtanh.f32 %v902_v35  ;;  %v1370_v48 = vmul.f32 -1.442695, %v902_v35  ;;  %1574 = vmatpush3.bf16.msra.mxu1 %v1573_v29  ;;  %v1168_v35 = vld [vmem:[#allocation8 + $0x28] sm:$0xff] }
 0xcb6   :  { %1702 = vpow2.f32 %v1369_v38  ;;  %1575 = vmatprep.subr.bf16.mxu1 %v1839_v4  ;;  %v1169_v38 = vld [vmem:[#allocation8 + $0x30] sm:$0xff] }
 0xcbf   :  { %v1701_v36 = vpop.eup %1700 }
 0xcc0   :  { %918 = vrot.lane.b32.xlu1 %v1701_v36, %s1838_s5  ;;  %v1703_v40 = vpop.eup %1702  ;;  %v1579_v36 = vpack.c.bf16 %v1168_v35, %v1167_v33 }
 0xcc1   :  { %v909_v41 = vadd.f32 1.0, %v1703_v40  ;;  %v1170_v40 = vld [vmem:[#allocation8 + $0x38] sm:$0xff] }
 0xcc3   :  { %1704 = vrcp.f32 %v909_v41  ;;  %v1582_v41 = vpack.c.bf16 %v1170_v40, %v1169_v38 }
 0xccd   :  { %v1705_v16 = vpop.eup %1704 }
 0xcce   :  { %v916_v52 = vmul.f32 %v1705_v16, %v815_v15 }
 0xd32   :  { %v919_v42 = vpop.permute.xlu1 %918 }
 0xd33   :  { %v921_v43 = vmul.f32 %v1705_v16, %v919_v42 }
 0xd35   :  { %923 = vrot.lane.b32.xlu0 %v921_v43, %s1838_s5 }
 0xda7   :  { %v924_v53 = vpop.permute.xlu0 %923 }
 0xda8   :  { %v926_v44 = vadd.f32 %v924_v53, %v916_v52 }
 0xdaa   :  { %1706 = vtanh.f32 %v926_v44 }
 0xdab   :  { %1708 = vpow2.f32 %v1370_v48  ;;  %v1155_v48 = vld [vmem:[#allocation6] sm:$0xff] }
 0xdb4   :  { %v1707_v47 = vpop.eup %1706 }
 0xdb5   :  { %929 = vrot.lane.b32.xlu1 %v1707_v47, %s1838_s5  ;;  %v1709_v51 = vpop.eup %1708 }
 0xdb6   :  { %v910_v54 = vadd.f32 1.0, %v1709_v51  ;;  %v1156_v51 = vld [vmem:[#allocation6 + $0x8] sm:$0xff] }
 0xdb8   :  { %1710 = vrcp.f32 %v910_v54 }
 0xdc2   :  { %v1711_v57 = vpop.eup %1710 }
 0xe27   :  { %v930_v59 = vpop.permute.xlu1 %929 }
 0xe28   :  { %v932_v62 = vmul.f32 %v1711_v57, %v930_v59  ;;  %v1585_v59 = vpack.c.bf16 %v1156_v51, %v1155_v48 }
 0xe2a   :  { %1371 = vmatmul.mubr.msk.f32.vlgmr.msra.gmra.mrb[8].mxu0 %vm271_vm1, %v932_v62 }
 0xe2b   :  { %1559 = vmatpush1.bf16.msra.mxu0 %v1952_v18  ;;  %1116 = vmatprep.mubr.f32.mxu0 %v1837_v0  ;;  %v226_v18 = vadd.f32 %v2051_v56, %v2060_v61  ;;  %v1165_v61 = vld [vmem:[#allocation8 + $0x10] sm:$0xff] }
 0xe2c   :  { %1561 = vmatprep.subr.bf16.mxu0 %v1954_v21  ;;  %v1576_v32 = vpack.c.bf16 %v1166_v31, %v1165_v61 }
 0xe2e   :  { %1577 = vmatpush3.bf16.msra.mxu1 %v1576_v32 }
 0xe2f   :  { %1563 = vmatpush1.bf16.msra.mxu0 %v1963_v27  ;;  %1578 = vmatprep.subr.bf16.mxu1 %v1839_v4 }
 0xe30   :  { %1565 = vmatprep.subr.bf16.mxu0 %v1966_v30 }
 0xe32   :  { %1580 = vmatpush3.bf16.msra.mxu1 %v1579_v36 }
 0xe33   :  { %1567 = vmatpush1.bf16.msra.mxu0 %v1975_v34  ;;  %1581 = vmatprep.subr.bf16.mxu1 %v1839_v4 }
 0xe34   :  { %1569 = vmatprep.subr.bf16.mxu0 %v1979_v37 }
 0xe36   :  { %1583 = vmatpush3.bf16.msra.mxu1 %v1582_v41 }
 0xe37   :  { %1571 = vmatpush1.bf16.msra.mxu0 %v1988_v39  ;;  %1584 = vmatprep.subr.bf16.mxu1 %v1839_v4 }
 0xefd   :  { %v1007_v1 = vpop.f32.mrb[8].mxu0 }
 0xefe   :  { %v1012_v2 = vadd.f32 %v1007_v1, %v224_v63  ;;  %v1009_v3 = vpop.f32.mrb[9].mxu0  ;;  %v1157_v63 = vld [vmem:[#allocation6 + $0x10] sm:$0xff] }
 0xeff   :  { %v1013_v21 = vadd.f32 %v1009_v3, %v226_v18  ;;  %v1158_v18 = vld [vmem:[#allocation6 + $0x18] sm:$0xff]  ;;  %v1160_v3 = vld [vmem:[#allocation6 + $0x28] sm:$0xff] }
 0xf00   :  { %v1372_v30 = vmul.f32 -1.442695, %v1012_v2  ;;  %v1588_v1 = vpack.c.bf16 %v1158_v18, %v1157_v63  ;;  %v1159_v2 = vld [vmem:[#allocation6 + $0x20] sm:$0xff] }
 0xf01   :  { %1712 = vtanh.f32 %v1013_v21  ;;  %v1373_v9 = vmul.f32 -1.442695, %v1013_v21  ;;  %v1591_v21 = vpack.c.bf16 %v1160_v3, %v1159_v2 }
 0xf02   :  { %1714 = vpow2.f32 %v1372_v30  ;;  %v1162_v30 = vld [vmem:[#allocation6 + $0x38] sm:$0xff] }
 0xf0b   :  { %v1713_v27 = vpop.eup %1712 }
 0xf0c   :  { %1029 = vrot.lane.b32.xlu0 %v1713_v27, %s1838_s5  ;;  %v1715_v34 = vpop.eup %1714  ;;  %v1161_v27 = vld [vmem:[#allocation6 + $0x30] sm:$0xff] }
 0xf0d   :  { %v1020_v37 = vadd.f32 1.0, %v1715_v34  ;;  %v1594_v34 = vpack.c.bf16 %v1162_v30, %v1161_v27 }
 0xf0f   :  { %1716 = vrcp.f32 %v1020_v37 }
 0xf19   :  { %v1717_v39 = vpop.eup %1716 }
 0xf1a   :  { %v1027_v55 = vmul.f32 %v1717_v39, %v926_v44 }
 0xf7e   :  { %v1030_v5 = vpop.permute.xlu0 %1029 }
 0xf7f   :  { %v1032_v6 = vmul.f32 %v1717_v39, %v1030_v5 }
 0xf81   :  { %1034 = vrot.lane.b32.xlu1 %v1032_v6, %s1838_s5 }
 0xff3   :  { %v1035_v56 = vpop.permute.xlu1 %1034 }
 0xff4   :  { %v1037_v7 = vadd.f32 %v1035_v56, %v1027_v55 }
 0xff6   :  { %1718 = vtanh.f32 %v1037_v7 }
 0xff7   :  { %1720 = vpow2.f32 %v1373_v9 }
0x1000   :  { %v1719_v8 = vpop.eup %1718 }
0x1001   :  { %1040 = vrot.lane.b32.xlu0 %v1719_v8, %s1838_s5  ;;  %v1721_v10 = vpop.eup %1720 }
0x1002   :  { %v1021_v11 = vadd.f32 1.0, %v1721_v10 }
0x1004   :  { %1722 = vrcp.f32 %v1021_v11 }
0x100e   :  { %v1723_v12 = vpop.eup %1722 }
0x1073   :  { %v1041_v13 = vpop.permute.xlu0 %1040 }
0x1074   :  { %v1043_v14 = vmul.f32 %v1723_v12, %v1041_v13 }
0x1076   :  { %1374 = vmatmul.mubr.msk.f32.vlgmr.msra.gmra.mrb[10].mxu0 %vm271_vm1, %v1043_v14 }
0x1149   :  { %v1118_v49 = vpop.f32.mrb[10].mxu0 }
0x114a   :  { %v1123_v50 = vadd.f32 %v1118_v49, %v230_v45  ;;  %v1120_v15 = vpop.f32.mrb[11].mxu0 }
0x114b   :  { %v1124_v17 = vadd.f32 %v1120_v15, %v232_v46 }
0x114c   :  { %v1375_v20 = vmul.f32 -1.442695, %v1123_v50 }
0x114d   :  { %1724 = vtanh.f32 %v1124_v17  ;;  %v1376_v53 = vmul.f32 -1.442695, %v1124_v17 }
0x114e   :  { %1726 = vpow2.f32 %v1375_v20 }
0x1157   :  { %v1725_v19 = vpop.eup %1724 }
0x1158   :  { %1140 = vrot.lane.b32.xlu1 %v1725_v19, %s1838_s5  ;;  %v1727_v22 = vpop.eup %1726 }
0x1159   :  { %v1131_v23 = vadd.f32 1.0, %v1727_v22 }
0x115b   :  { %1728 = vrcp.f32 %v1131_v23 }
0x1165   :  { %v1729_v25 = vpop.eup %1728 }
0x1166   :  { %v1138_v16 = vmul.f32 %v1729_v25, %v1037_v7 }
0x11ca   :  { %v1141_v26 = vpop.permute.xlu1 %1140 }
0x11cb   :  { %v1143_v28 = vmul.f32 %v1729_v25, %v1141_v26 }
0x11cd   :  { %1145 = vrot.lane.b32.xlu0 %v1143_v28, %s1838_s5 }
0x123f   :  { %v1146_v42 = vpop.permute.xlu0 %1145 }
0x1240   :  { %v1148_v43 = vadd.f32 %v1146_v42, %v1138_v16 }
0x1242   :  { %1730 = vtanh.f32 %v1148_v43 }
0x1243   :  { %1732 = vpow2.f32 %v1376_v53 }
0x124c   :  { %v1731_v52 = vpop.eup %1730 }
0x124d   :  { %1151 = vrot.lane.b32.xlu1 %v1731_v52, %s1838_s5  ;;  %v1733_v44 = vpop.eup %1732 }
0x124e   :  { %v1132_v47 = vadd.f32 1.0, %v1733_v44 }
0x1250   :  { %1734 = vrcp.f32 %v1132_v47 }
0x125a   :  { %v1735_v54 = vpop.eup %1734 }
0x12bf   :  { %v1152_v57 = vpop.permute.xlu1 %1151 }
0x12c0   :  { %v1154_v62 = vmul.f32 %v1735_v54, %v1152_v57 }
0x12c2   :  { %1415 = vmatmul.mubr.msk.f32.vlgmr.msra.gmra.mrb[16].mxu1 %vm271_vm1, %v1154_v62 }
0x12c3   :  { %1586 = vmatpush3.bf16.msra.mxu1 %v1585_v59  ;;  %1433 = vmatprep.mubr.msk.f32.mxu1 %vm1840_vm2, %v1837_v0  ;;  %v1379_v0 = vld [vmem:[%s2198_s6] ss:$0 sm:$0xff] }
0x12c4   :  { %1587 = vmatprep.subr.bf16.mxu1 %v1839_v4 }
0x12c7   :  { %1589 = vmatpush3.bf16.msra.mxu1 %v1588_v1 }
0x12c8   :  { %1590 = vmatprep.subr.bf16.mxu1 %v1839_v4 }
0x12cb   :  { %1592 = vmatpush3.bf16.msra.mxu1 %v1591_v21 }
0x12cc   :  { %1593 = vmatprep.subr.bf16.mxu1 %v1839_v4 }
0x12cf   :  { %1595 = vmatpush3.bf16.msra.mxu1 %v1594_v34 }
0x12d2   :  { %1434 = vmatmul.mubr.msk.f32.vlgmr.msra.gmra.mrb[18].mxu1 %vm271_vm1, %v2069_v24 }
0x1395   :  { %v1240_v37 = vpop.f32.mrb[16].mxu1 }
0x1396   :  { %v1416_v39 = vpop.f32.mrb[17].mxu1 }
0x13a5   :  { %v1310_v5 = vpop.f32.mrb[18].mxu1 }
0x13a6   :  { %v1311_v6 = vadd.f32 %v1310_v5, %v1240_v37  ;;  %v1435_v55 = vpop.f32.mrb[19].mxu1 }
0x13a8   :  { %v1321_v56 = vadd.f32 %v1379_v0, %v1311_v6 }
0x13aa   :  { %1322 = vst [vmem:[#allocation9] sm:$0xff] %v1321_v56 }
0x13ab   :  { %1813 = shalt.err (!%p1810_p0)
}
0x13ac   :  { %s1814_s27 = scalar_lea.hbm %s2199_s7, 128 }
0x13ad   :  { %p1815_p1 = scmp.ne.s32.totalorder %s2199_s7, %s1814_s27  ;;  %p1818_p2 = scmp.lt.u32.totalorder %s1814_s27, %s2199_s7 }
0x13af   :  { %p1820_p3 = pnand %p1818_p2, %p1815_p1 }
0x13b1   :  { %1823 = shalt.err (!%p1820_p3)
}
0x13b2   :  { %1332 = dma.vmem_to_hbm [thread:$0]  %s1330_s24, 128, %s2199_s7, [#allocation5]  }
0x13b3   :  { %1828 = dma.done.wait [#allocation5], 128  }
0x13b4   :  { %1829 = vsyncadd [#allocation5], 4294967168 }
0x13b5   :  { %1336 = vsyncpa [#allocation4], 1 }
0x13b6   :  { %1337 = vsyncpa [#allocation7], 1 }
0x13b7   :  { %1338 = vsyncpa [#allocation5], 1 }

</bundles_post_ra>
